<compile_context>
chip_gen: v7x
topology: tpu7x:2x2x1
jax: 0.10.0
libtpu: 0.0.40
codegen_flags: <defaults>
</compile_context>

<pallas_src>
import jax
import jax.numpy as jnp
from jax.experimental import pallas as pl
from jax.experimental.pallas import tpu as pltpu

IN_DIM = 768
HID_DIM = 100
OUT_DIM = 6
HID_PAD = 128      # 100 -> 128 (lane multiple)
OUT_PAD = 128      # 6   -> 128 (lane-dense unmasked output store)
BN_EPS = 1e-5
SUBLANE = 16       # bf16 packs 16 rows per vreg


def net_kernel(x_ref, w1_ref, bias_ref, w2_ref, out_ref):
    # fc1 (BN folded in) + ReLU.  bf16 operands, f32 MXU accumulation.
    h1 = jnp.dot(x_ref[...], w1_ref[...], preferred_element_type=jnp.float32)
    h1 = jnp.maximum(h1 + bias_ref[0:1, :], 0.0)            # (tile_m, 128) f32
    # fc2 (bf16 operands again -> single-pass MXU)
    h1 = h1.astype(jnp.bfloat16)
    out = jnp.dot(h1, w2_ref[...], preferred_element_type=jnp.float32)
    out_ref[...] = out + bias_ref[1:2, :]                    # (tile_m, 128) f32


def _round_up(n, m):
    return ((n + m - 1) // m) * m


def fold_params(params):
    """Fold BN into fc1, zero-pad to lane-multiple shapes, cast weights to bf16.
    Done once, offline."""
    gamma, beta, running_mean, running_var, w1_t, b1, w2_t, b2 = params
    a = gamma * jax.lax.rsqrt(running_var + BN_EPS)          # (1, 768)
    shift = beta - running_mean * a                          # (1, 768)
    w1_fold = w1_t * a.reshape(IN_DIM, 1)                    # (768, 100)
    b1_fold = shift @ w1_t + b1                              # (1, 100)

    w1p = jnp.zeros((IN_DIM, HID_PAD), jnp.float32).at[:, :HID_DIM].set(w1_fold)
    w2p = jnp.zeros((HID_PAD, OUT_PAD), jnp.float32).at[:HID_DIM, :OUT_DIM].set(w2_t)
    # Merge both biases into one (2, 128) f32 operand: row 0 = fc1+BN bias,
    # row 1 = fc2 bias.
    biases = jnp.zeros((2, HID_PAD), jnp.float32)
    biases = biases.at[0, :HID_DIM].set(b1_fold[0])
    biases = biases.at[1, :OUT_DIM].set(b2[0])
    return w1p.astype(jnp.bfloat16), biases, w2p.astype(jnp.bfloat16)


def net_forward(x, folded_params):
    """x: (768,) vector or (B, 768) batch (ideally already bf16 upstream).
    Returns (B, 6) f32 logits (B == 1 for a single vector, matching
    x.unsqueeze(0) in the module)."""
    w1p, biases, w2p = folded_params
    x2d = x.reshape(1, IN_DIM) if x.ndim == 1 else x
    if x2d.dtype != jnp.bfloat16:
        # For full bandwidth benefit the caller should hold x in bf16 already;
        # this cast is a fallback for f32 callers.
        x2d = x2d.astype(jnp.bfloat16)
    b = x2d.shape[0]

    if b < 32:
        # One block exactly equal to the (small) batch: no padding, no masking.
        tile_m, grid_m = b, 1
    else:
        # >= 2 parallel grid steps so both v7x TensorCores get work; cap the
        # tile at 1024 rows (~85% of HBM roofline per measured tile sweep).
        # Ragged last block is masked by Pallas -- no wrapper-side jnp.pad.
        tile_m = min(1024, _round_up(pl.cdiv(b, 2), SUBLANE))
        grid_m = pl.cdiv(b, tile_m)

    out = pl.pallas_call(
        net_kernel,
        out_shape=jax.ShapeDtypeStruct((b, OUT_PAD), jnp.float32),
        grid_spec=pltpu.PrefetchScalarGridSpec(
            num_scalar_prefetch=0,
            grid=(grid_m,),
            in_specs=[
                pl.BlockSpec((tile_m, IN_DIM), lambda i: (i, 0)),    # x (bf16)
                pl.BlockSpec((IN_DIM, HID_PAD), lambda i: (0, 0)),   # W1' (bf16)
                pl.BlockSpec((2, HID_PAD), lambda i: (0, 0)),        # biases (f32)
                pl.BlockSpec((HID_PAD, OUT_PAD), lambda i: (0, 0)),  # W2 (bf16)
            ],
            out_specs=pl.BlockSpec((tile_m, OUT_PAD), lambda i: (i, 0)),
        ),
        compiler_params=pltpu.CompilerParams(
            dimension_semantics=("parallel",)),
    )(x2d, w1p, biases, w2p)

    # Semantically required (B, 6) result; padded columns are discarded here.
    return out[:, :OUT_DIM]


def init_params(key):
    ks = jax.random.split(key, 8)
    # BatchNorm1d(768) parameters / buffers (shaped (1, 768) for lane layout)
    gamma = jax.random.normal(ks[0], (1, IN_DIM), jnp.float32) * 0.1 + 1.0
    beta = jax.random.normal(ks[1], (1, IN_DIM), jnp.float32) * 0.1
    running_mean = jax.random.normal(ks[2], (1, IN_DIM), jnp.float32) * 0.1
    running_var = jax.random.uniform(ks[3], (1, IN_DIM), jnp.float32,
                                     minval=0.5, maxval=1.5)
    # Linear(768, 100): torch stores W as (out, in); we keep W^T = (in, out)
    w1_t = jax.random.normal(ks[4], (IN_DIM, HID_DIM), jnp.float32) * 0.02
    b1 = jax.random.normal(ks[5], (1, HID_DIM), jnp.float32) * 0.02
    # Linear(100, 6)
    w2_t = jax.random.normal(ks[6], (HID_DIM, OUT_DIM), jnp.float32) * 0.02
    b2 = jax.random.normal(ks[7], (1, OUT_DIM), jnp.float32) * 0.02
    return (gamma, beta, running_mean, running_var, w1_t, b1, w2_t, b2)


def net_reference(x, params):
    """Pure-f32 reference (inference-mode BN)."""
    gamma, beta, running_mean, running_var, w1_t, b1, w2_t, b2 = params
    h = x.reshape(-1, IN_DIM).astype(jnp.float32)
    h = (h - running_mean) * jax.lax.rsqrt(running_var + BN_EPS) * gamma + beta
    h = jnp.maximum(h @ w1_t + b1, 0.0)
    return h @ w2_t + b2


def net_reference_folded(x, folded_params):
    """Reference mirroring the kernel's dtype pipeline (bf16 operands, f32 acc)."""
    w1p, biases, w2p = folded_params
    xb = x.reshape(-1, IN_DIM).astype(jnp.bfloat16).astype(jnp.float32)
    h1 = jnp.maximum(xb @ w1p.astype(jnp.float32) + biases[0:1], 0.0)
    h1 = h1.astype(jnp.bfloat16).astype(jnp.float32)
    out = h1 @ w2p.astype(jnp.float32) + biases[1:2]
    return out[:, :OUT_DIM]


if __name__ == "__main__":
    key = jax.random.PRNGKey(0)
    pkey, xkey, bkey = jax.random.split(key, 3)
    params = init_params(pkey)
    folded = fold_params(params)

    # Single-vector path (matches the module's x.unsqueeze(0) semantics).
    x = jax.random.normal(xkey, (IN_DIM,), jnp.float32)
    out = jax.block_until_ready(net_forward(x, folded))
    assert out.shape == (1, OUT_DIM), out.shape
    # Tight check against the bf16-mirrored reference.
    assert jnp.allclose(out, net_reference_folded(x, folded), atol=1e-4, rtol=1e-4)
    # Loose sanity check against the full-f32 reference (bf16 operand rounding).
    assert jnp.allclose(out, net_reference(x, params), atol=2e-2, rtol=2e-2)

    # Batched path: B=40 exercises the >=2-step parallel grid (v7x TC sharding)
    # and the ragged, masked last block (no wrapper-side padding).
    xb = jax.random.normal(bkey, (40, IN_DIM), jnp.float32).astype(jnp.bfloat16)
    outb = jax.block_until_ready(net_forward(xb, folded))
    assert outb.shape == (40, OUT_DIM), outb.shape
    assert jnp.allclose(outb, net_reference_folded(xb, folded), atol=1e-4, rtol=1e-4)
    assert jnp.allclose(outb, net_reference(xb, params), atol=2e-2, rtol=2e-2)

    print("KERNEL_OK")
</pallas_src>

<mosaic_0001>
module attributes {stable_mosaic.version = 11 : i64} {
  func.func @net_kernel(%arg0: i32, %arg1: memref<1x768xbf16, #tpu.memory_space<vmem>>, %arg2: memref<768x128xbf16, #tpu.memory_space<vmem>>, %arg3: memref<2x128xf32, #tpu.memory_space<vmem>>, %arg4: memref<128x128xbf16, #tpu.memory_space<vmem>>, %arg5: memref<1x128xf32, #tpu.memory_space<vmem>>) attributes {dimension_semantics = [#tpu.dimension_semantics<parallel>], iteration_bounds = array<i64: 1>, scalar_prefetch = 0 : i64, scratch_operands = 0 : i64, tpu.core_type = #tpu.core_type<tc>, window_params = [{transform_indices = @transform_0, window_bounds = array<i64: 1, 768>}, {pipeline_mode = #tpu.pipeline_mode<synchronous>, transform_indices = @transform_1, window_bounds = array<i64: 768, 128>}, {pipeline_mode = #tpu.pipeline_mode<synchronous>, transform_indices = @transform_2, window_bounds = array<i64: 2, 128>}, {pipeline_mode = #tpu.pipeline_mode<synchronous>, transform_indices = @transform_3, window_bounds = array<i64: 128, 128>}, {transform_indices = @transform_4, window_bounds = array<i64: 1, 128>}]} {
    %c0 = arith.constant 0 : index
    %c0_0 = arith.constant 0 : index
    %0 = vector.load %arg1[%c0, %c0_0] : memref<1x768xbf16, #tpu.memory_space<vmem>>, vector<1x768xbf16>
    %c0_1 = arith.constant 0 : index
    %c0_2 = arith.constant 0 : index
    %1 = vector.load %arg2[%c0_1, %c0_2] : memref<768x128xbf16, #tpu.memory_space<vmem>>, vector<768x128xbf16>
    %cst = arith.constant dense<0.000000e+00> : vector<1x128xf32>
    %2 = tpu.matmul %0, %1, %cst {dimension_numbers = #tpu.dot_dimension_numbers<[1], [0], [0], [1], [0, 0, 1, 1], [], []>} : vector<1x768xbf16>, vector<768x128xbf16>, vector<1x128xf32> -> vector<1x128xf32>
    %c0_3 = arith.constant 0 : index
    %c0_4 = arith.constant 0 : index
    %3 = vector.load %arg3[%c0_3, %c0_4] : memref<2x128xf32, #tpu.memory_space<vmem>>, vector<1x128xf32>
    %4 = arith.addf %2, %3 : vector<1x128xf32>
    %cst_5 = arith.constant 0.000000e+00 : f32
    %5 = vector.broadcast %cst_5 : f32 to vector<1x128xf32>
    %6 = arith.maximumf %4, %5 : vector<1x128xf32>
    %7 = arith.truncf %6 : vector<1x128xf32> to vector<1x128xbf16>
    %c0_6 = arith.constant 0 : index
    %c0_7 = arith.constant 0 : index
    %8 = vector.load %arg4[%c0_6, %c0_7] : memref<128x128xbf16, #tpu.memory_space<vmem>>, vector<128x128xbf16>
    %cst_8 = arith.constant dense<0.000000e+00> : vector<1x128xf32>
    %9 = tpu.matmul %7, %8, %cst_8 {dimension_numbers = #tpu.dot_dimension_numbers<[1], [0], [0], [1], [0, 0, 1, 1], [], []>} : vector<1x128xbf16>, vector<128x128xbf16>, vector<1x128xf32> -> vector<1x128xf32>
    %c1 = arith.constant 1 : index
    %c0_9 = arith.constant 0 : index
    %10 = vector.load %arg3[%c1, %c0_9] : memref<2x128xf32, #tpu.memory_space<vmem>>, vector<1x128xf32>
    %11 = arith.addf %9, %10 : vector<1x128xf32>
    %c0_10 = arith.constant 0 : index
    %c0_11 = arith.constant 0 : index
    %12 = vector.load %arg5[%c0_10, %c0_11] : memref<1x128xf32, #tpu.memory_space<vmem>>, vector<1x128xf32>
    tpu.vector_store %arg5[%c0_10, %c0_11], %11 {strides = array<i32>} : memref<1x128xf32, #tpu.memory_space<vmem>>, vector<1x128xf32>,
    return
  }
  func.func @transform_0(%arg0: i32) -> (i32, i32) {
    %c0_i32 = arith.constant 0 : i32
    %c0_i32_0 = arith.constant 0 : i32
    return %arg0, %c0_i32 : i32, i32
  }
  func.func @transform_1(%arg0: i32) -> (i32, i32) {
    %c0_i32 = arith.constant 0 : i32
    %c0_i32_0 = arith.constant 0 : i32
    %c0_i32_1 = arith.constant 0 : i32
    return %c0_i32, %c0_i32_0 : i32, i32
  }
  func.func @transform_2(%arg0: i32) -> (i32, i32) {
    %c0_i32 = arith.constant 0 : i32
    %c0_i32_0 = arith.constant 0 : i32
    %c0_i32_1 = arith.constant 0 : i32
    return %c0_i32, %c0_i32_0 : i32, i32
  }
  func.func @transform_3(%arg0: i32) -> (i32, i32) {
    %c0_i32 = arith.constant 0 : i32
    %c0_i32_0 = arith.constant 0 : i32
    %c0_i32_1 = arith.constant 0 : i32
    return %c0_i32, %c0_i32_0 : i32, i32
  }
  func.func @transform_4(%arg0: i32) -> (i32, i32) {
    %c0_i32 = arith.constant 0 : i32
    %c0_i32_0 = arith.constant 0 : i32
    return %arg0, %c0_i32 : i32, i32
  }
}

</mosaic_0001>

<bundles_post_ra>
// kernel: tpu_custom_call.1
= control target key start
LH: loop header
LB: loop body
LE: loop exit
PB: predicated region body
PF: predicated region fallthrough
CT: control target
= control target key end

     0   :  { %9 = vsyncpa [#allocation3], 0  ;;  %s1147_s0 = inlined_call_operand.hbm [shape: bf16[1,768], index: 0, kind: input, shape index: {}]   ;;  %s1148_s1 = inlined_call_operand.hbm [shape: bf16[768,128], index: 1, kind: input, shape index: {}]   ;;  %s1149_s2 = inlined_call_operand.vmem [shape: f32[2,128], index: 2, kind: input, shape index: {}]   ;;  %s1150_s3 = inlined_call_operand.hbm [shape: bf16[128,128], index: 3, kind: input, shape index: {}]   ;;  %s1151_s4 = inlined_call_operand.hbm [shape: f32[1,128], index: 4, kind: output, shape index: {}]  }
   0x1   :  { %10 = vsyncpa [#allocation6], 0 }
   0x2   :  { %11 = vsyncpa [#allocation4], 0  ;;  %s1053_s15 = smov [#allocation5]   ;;  %s959_s19 = scalar_lea.hbm %s1148_s1, 6144 }
   0x3   :  { %s27_s16 = sshll.u32 %s1053_s15, 4  ;;  %p960_p0 = scmp.ne.s32.totalorder %s1148_s1, %s959_s19  ;;  %s28_s16 = int_to_ptr.vmem [resolvable:$true] %s27_s16 }
   0x4   :  { %p963_p1 = scmp.lt.u32.totalorder %s959_s19, %s1148_s1 }
   0x6   :  { %p965_p2 = pnand %p963_p1, %p960_p0 }
   0x8   :  { %968 = shalt.err (!%p965_p2)
}
   0x9   :  { %s969_s24 = scalar_lea.vmem %s28_s16, 6144  ;;  %p974_p4 = scmp.lt.s32.totalorder %s28_s16, %s28_s16 }
   0xa   :  { %p970_p3 = scmp.ne.s32.totalorder %s28_s16, %s969_s24  ;;  %p975_p5 = scmp.lt.s32.totalorder %s969_s24, %s969_s24 }
   0xc   :  { %p976_p6 = por %p975_p5, %p974_p4 }
   0xe   :  { %p977_p7 = pnand %p976_p6, %p970_p3 }
  0x10   :  { %980 = shalt.err (!%p977_p7)
}
  0x11   :  { %s1054_s25 = smov 64   ;;  %s1055_s26 = smov 4  }
  0x12   :  { %33 = dma.hbm_to_vmem [thread:$0]  %s1148_s1, 6144, %s28_s16, [#allocation6], %s1054_s25, %s1054_s25, %s1055_s26  }
  0x13   :  { %s1056_s29 = smov [#allocation2]   ;;  %s1057_s5 = smov [#allocation7]  }
  0x14   :  { %s18_s30 = sshll.u32 %s1056_s29, 4  ;;  %s41_s6 = sshll.u32 %s1057_s5, 4  ;;  %s19_s30 = int_to_ptr.vmem [resolvable:$true] %s18_s30  ;;  %s42_s6 = int_to_ptr.vmem [resolvable:$true] %s41_s6 }
  0x15   :  { %s981_s9 = scalar_lea.hbm %s1147_s0, 96 }
  0x16   :  { %p982_p8 = scmp.ne.s32.totalorder %s1147_s0, %s981_s9  ;;  %p985_p9 = scmp.lt.u32.totalorder %s981_s9, %s1147_s0 }
  0x18   :  { %p987_p10 = pnand %p985_p9, %p982_p8 }
  0x1a   :  { %990 = shalt.err (!%p987_p10)
}
  0x1b   :  { %s991_s1 = scalar_lea.vmem %s19_s30, 96  ;;  %p996_p12 = scmp.lt.s32.totalorder %s19_s30, %s19_s30 }
  0x1c   :  { %p992_p11 = scmp.ne.s32.totalorder %s19_s30, %s991_s1  ;;  %p997_p13 = scmp.lt.s32.totalorder %s991_s1, %s991_s1 }
  0x1e   :  { %p998_p0 = por %p997_p13, %p996_p12 }
  0x20   :  { %p999_p1 = pnand %p998_p0, %p992_p11 }
  0x22   :  { %1002 = shalt.err (!%p999_p1)
}
  0x23   :  { %21 = dma.hbm_to_vmem [thread:$0]  %s1147_s0, 96, %s19_s30, [#allocation3]  }
  0x24   :  { %s1003_s18 = scalar_lea.hbm %s1150_s3, 1024 }
  0x25   :  { %p1004_p2 = scmp.ne.s32.totalorder %s1150_s3, %s1003_s18  ;;  %p1007_p3 = scmp.lt.u32.totalorder %s1003_s18, %s1150_s3 }
  0x27   :  { %p1009_p4 = pnand %p1007_p3, %p1004_p2 }
  0x29   :  { %1012 = shalt.err (!%p1009_p4)
}
  0x2a   :  { %s1013_s23 = scalar_lea.vmem %s42_s6, 1024  ;;  %p1018_p6 = scmp.lt.s32.totalorder %s42_s6, %s42_s6 }
  0x2b   :  { %p1014_p5 = scmp.ne.s32.totalorder %s42_s6, %s1013_s23  ;;  %p1019_p7 = scmp.lt.s32.totalorder %s1013_s23, %s1013_s23 }
  0x2d   :  { %p1020_p8 = por %p1019_p7, %p1018_p6 }
  0x2f   :  { %p1021_p9 = pnand %p1020_p8, %p1014_p5 }
  0x31   :  { %1024 = shalt.err (!%p1021_p9)
}
  0x32   :  { %47 = dma.hbm_to_vmem [thread:$0]  %s1150_s3, 1024, %s42_s6, [#allocation6], %s1054_s25, %s1054_s25, %s1055_s26  }
  0x33   :  { %1047 = dma.done.wait [#allocation3], 96  }
  0x34   :  { %1048 = vsyncadd [#allocation3], 4294967200 }
  0x35   :  { %1049 = dma.done.wait [#allocation6], 7168  }
  0x36   :  { %1050 = vsyncadd [#allocation6], 4294960128  ;;  %v902_v0 = vld [vmem:[#allocation5 + $0x40] sm:$0xff]   ;;  %v906_v4 = vld [vmem:[#allocation5 + $0x48] sm:$0xff]   ;;  %v1058_v21 = vmov 1966171168   ;;  %v161_v23 = vlaneseq }
  0x37   :  { %v903_v1 = vld [vmem:[#allocation5] sm:$0xff]   ;;  %798 = vmatprep.subr.bf16.mxu0 %v902_v0  ;;  %v907_v5 = vld [vmem:[#allocation5 + $0x8] sm:$0xff]   ;;  %v910_v8 = vld [vmem:[#allocation5 + $0x50] sm:$0xff]   ;;  %v159_v22 = vunpack.c.l.s4 %v1058_v21  ;;  %vm1060_vm0 = vmmov 0   ;;  %s1061_s28 = smov [#allocation8]  }
  0x38   :  { %v904_v2 = vld [vmem:[#allocation5 + $0xc0] sm:$0xff]   ;;  %799 = vmatpush3.bf16.msra.mxu0 %v903_v1  ;;  %v908_v6 = vld [vmem:[#allocation5 + $0xc8] sm:$0xff]   ;;  %v911_v9 = vld [vmem:[#allocation5 + $0x10] sm:$0xff]   ;;  %v162_v29 = vshrl.u32 %v161_v23, 7  ;;  %s732_s29 = sshll.u32 %s1061_s28, 4  ;;  %s733_s29 = int_to_ptr.vmem [resolvable:$true] %s732_s29 }
  0x39   :  { %v905_v3 = vld [vmem:[#allocation5 + $0x80] sm:$0xff]   ;;  %820 = vmatprep.subr.bf16.mxu1 %v904_v2  ;;  %800 = vmatprep.subr.bf16.mxu0 %v906_v4  ;;  %v909_v7 = vld [vmem:[#allocation5 + $0x88] sm:$0xff]   ;;  %v912_v10 = vld [vmem:[#allocation5 + $0xd0] sm:$0xff]   ;;  %v160_v28 = vunpack.c.0.s8 %v159_v22  ;;  %s1025_s30 = scalar_lea.vmem %s733_s29, 16  ;;  %s1029_s5 = scalar_lea.vmem %s733_s29, 32 }
  0x3a   :  { %821 = vmatpush3.bf16.msra.mxu1 %v905_v3  ;;  %v913_v11 = vld [vmem:[#allocation5 + $0x90] sm:$0xff]   ;;  %v914_v12 = vld [vmem:[#allocation5 + $0x58] sm:$0xff]   ;;  %v918_v16 = vld [vmem:[#allocation5 + $0x60] sm:$0xff]   ;;  %v1059_v3 = vmov 0.0   ;;  %p1026_p10 = scmp.ne.s32.totalorder %s733_s29, %s1025_s30  ;;  %p1030_p11 = scmp.lt.s32.totalorder %s733_s29, %s733_s29 }
  0x3b   :  { %822 = vmatprep.subr.bf16.mxu1 %v908_v6  ;;  %v915_v13 = vld [vmem:[#allocation5 + $0x18] sm:$0xff]   ;;  %v919_v17 = vld [vmem:[#allocation5 + $0x20] sm:$0xff]   ;;  %v922_v20 = vld [vmem:[#allocation5 + $0x68] sm:$0xff]   ;;  %v163_v34 = vsub.s32 %v160_v28, %v162_v29  ;;  %p1031_p12 = scmp.lt.s32.totalorder %s1029_s5, %s1025_s30 }
  0x3c   :  { %801 = vmatpush3.bf16.msra.mxu0 %v907_v5  ;;  %v916_v14 = vld [vmem:[#allocation5 + $0xd8] sm:$0xff]   ;;  %v920_v18 = vld [vmem:[#allocation5 + $0xe0] sm:$0xff]   ;;  %v923_v24 = vld [vmem:[#allocation5 + $0x28] sm:$0xff]  }
  0x3d   :  { %802 = vmatprep.subr.bf16.mxu0 %v910_v8  ;;  %v917_v15 = vld [vmem:[#allocation5 + $0x98] sm:$0xff]   ;;  %v921_v19 = vld [vmem:[#allocation5 + $0xa0] sm:$0xff]   ;;  %v924_v25 = vld [vmem:[#allocation5 + $0xe8] sm:$0xff]   ;;  %p1032_p13 = por %p1031_p12, %p1030_p11 }
  0x3e   :  { %823 = vmatpush3.bf16.msra.mxu1 %v909_v7  ;;  %v925_v26 = vld [vmem:[#allocation5 + $0xa8] sm:$0xff]   ;;  %v926_v27 = vld [vmem:[#allocation5 + $0x70] sm:$0xff]   ;;  %v930_v33 = vld [vmem:[#allocation5 + $0x78] sm:$0xff]  }
  0x3f   :  { %824 = vmatprep.subr.bf16.mxu1 %v912_v10  ;;  %v927_v30 = vld [vmem:[#allocation5 + $0x30] sm:$0xff]   ;;  %v931_v35 = vld [vmem:[#allocation5 + $0x38] sm:$0xff]   ;;  %v935_v41 = vld [vmem:[#allocation5 + $0x140] sm:$0xff]   ;;  %p1033_p0 = pnand %p1032_p13, %p1026_p10 }
  0x40   :  { %803 = vmatpush3.bf16.msra.mxu0 %v911_v9  ;;  %v928_v31 = vld [vmem:[#allocation5 + $0xf0] sm:$0xff]   ;;  %v932_v36 = vld [vmem:[#allocation5 + $0xf8] sm:$0xff]   ;;  %v936_v46 = vld [vmem:[#allocation5 + $0x100] sm:$0xff]  }
  0x41   :  { %804 = vmatprep.subr.bf16.mxu0 %v914_v12  ;;  %v929_v32 = vld [vmem:[#allocation5 + $0xb0] sm:$0xff]   ;;  %v58_v37 = vld [vmem:[#allocation2] sm:$0x3f]  ;;  %v937_v49 = vld [vmem:[#allocation5 + $0x148] sm:$0xff]  }
  0x42   :  { %825 = vmatpush3.bf16.msra.mxu1 %v913_v11  ;;  %v157_v38 = vcombine.high %v58_v37, %v58_v37  ;;  %v164_v39 = vrot.slane %v58_v37, %v163_v34  ;;  %v934_v40 = vld [vmem:[#allocation5 + $0xb8] sm:$0xff]   ;;  %v938_v52 = vld [vmem:[#allocation5 + $0x108] sm:$0xff]   ;;  %v939_v53 = vld [vmem:[#allocation5 + $0x150] sm:$0xff]  }
  0x43   :  { %826 = vmatprep.subr.bf16.mxu1 %v916_v14  ;;  %v940_v54 = vld [vmem:[#allocation5 + $0x110] sm:$0xff]   ;;  %v941_v55 = vld [vmem:[#allocation5 + $0x158] sm:$0xff]   ;;  %v943_v57 = vld [vmem:[#allocation5 + $0x160] sm:$0xff]  }
  0x44   :  { %805 = vmatpush3.bf16.msra.mxu0 %v915_v13  ;;  %v172_v42 = vcombine.high %v164_v39, %v164_v39  ;;  %v180_v43 = vrot.slane %v164_v39, %v163_v34  ;;  %v171_v44 = vrot.slane %v157_v38, %v163_v34  ;;  %v942_v56 = vld [vmem:[#allocation5 + $0x118] sm:$0xff]   ;;  %v944_v58 = vld [vmem:[#allocation5 + $0x120] sm:$0xff]   ;;  %v945_v59 = vld [vmem:[#allocation5 + $0x168] sm:$0xff]  }
  0x45   :  { %806 = vmatprep.subr.bf16.mxu0 %v918_v16  ;;  %v946_v60 = vld [vmem:[#allocation5 + $0x128] sm:$0xff]   ;;  %v947_v61 = vld [vmem:[#allocation5 + $0x170] sm:$0xff]   ;;  %v949_v63 = vld [vmem:[#allocation5 + $0x178] sm:$0xff]  }
  0x46   :  { %827 = vmatpush3.bf16.msra.mxu1 %v917_v15  ;;  %v194_v45 = vrot.slane %v172_v42, %v163_v34  ;;  %v173_v47 = vcombine.high %v171_v44, %v171_v44  ;;  %v202_v48 = vcombine.high %v180_v43, %v180_v43  ;;  %v948_v62 = vld [vmem:[#allocation5 + $0x130] sm:$0xff]   ;;  %v950_v0 = vld [vmem:[#allocation5 + $0x138] sm:$0xff]   ;;  %v187_v1 = vrot.slane %v171_v44, %v163_v34  ;;  %v951_v2 = vld [vmem:[#allocation7] sm:$0xff]  }
  0x47   :  { %828 = vmatprep.subr.bf16.mxu1 %v920_v18  ;;  %v952_v4 = vld [vmem:[#allocation7 + $0x8] sm:$0xff]   ;;  %v953_v5 = vld [vmem:[#allocation7 + $0x10] sm:$0xff]   ;;  %v954_v6 = vld [vmem:[#allocation7 + $0x18] sm:$0xff]  }
  0x48   :  { %807 = vmatpush3.bf16.msra.mxu0 %v919_v17  ;;  %530 = vmatprep.mubr.bf16.mxu0 %v194_v45  ;;  %v203_v50 = vcombine.high %v194_v45, %v194_v45  ;;  %v201_v51 = vrot.slane %v173_v47, %v163_v34  ;;  %v955_v7 = vld [vmem:[#allocation7 + $0x20] sm:$0xff]   ;;  %v956_v8 = vld [vmem:[#allocation7 + $0x28] sm:$0xff]   ;;  %v957_v9 = vld [vmem:[#allocation7 + $0x30] sm:$0xff]  }
  0x49   :  { %808 = vmatprep.subr.bf16.mxu0 %v922_v20  ;;  %v958_v10 = vld [vmem:[#allocation7 + $0x38] sm:$0xff]  }
  0x4a   :  { %829 = vmatpush3.bf16.msra.mxu1 %v921_v19  ;;  %570 = vmatprep.mubr.bf16.mxu1 %v203_v50  ;;  %v155_v12 = vld [vmem:[%s1149_s2] sm:$0x1] }
  0x4b   :  { %830 = vmatprep.subr.bf16.mxu1 %v924_v25 }
  0x4c   :  { %809 = vmatpush3.bf16.msra.mxu0 %v923_v24 }
  0x4d   :  { %810 = vmatprep.subr.bf16.mxu0 %v926_v27 }
  0x4e   :  { %831 = vmatpush3.bf16.msra.mxu1 %v925_v26 }
  0x4f   :  { %832 = vmatprep.subr.bf16.mxu1 %v928_v31 }
  0x50   :  { %811 = vmatpush3.bf16.msra.mxu0 %v927_v30 }
  0x51   :  { %812 = vmatprep.subr.bf16.mxu0 %v930_v33 }
  0x52   :  { %833 = vmatpush3.bf16.msra.mxu1 %v929_v32  ;;  %v636_v32 = vld [vmem:[%s1149_s2 + $0x1] sm:$0x1] }
  0x53   :  { %834 = vmatprep.subr.bf16.mxu1 %v932_v36 }
  0x54   :  { %813 = vmatpush3.bf16.msra.mxu0 %v931_v35 }
  0x55   :  { %842 = vmatprep.subr.bf16.mxu0 %v935_v41 }
  0x56   :  { %835 = vmatpush3.bf16.msra.mxu1 %v934_v40 }
  0x57   :  { %531 = vmatmul.mubr.bf16.vlgmr.msra.gmra.mrb[0].mxu0 %v180_v43  ;;  %873 = vmatprep.subr.bf16.mxu1 %v1059_v3 }
  0x58   :  { %843 = vmatpush3.bf16.msra.mxu0 %v936_v46  ;;  %610 = vmatprep.mubr.bf16.mxu0 %v201_v51 }
  0x59   :  { %571 = vmatmul.mubr.bf16.vlgmr.msra.gmra.mrb[0].mxu1 %v202_v48  ;;  %844 = vmatprep.subr.bf16.mxu0 %v937_v49 }
  0x5a   :  { %874 = vmatpush3.bf16.msra.mxu1 %v951_v2  ;;  %889 = vmatprep.mubr.msk.bf16.mxu1 %vm1060_vm0, %v1059_v3 }
  0x5b   :  { %875 = vmatprep.subr.bf16.mxu1 %v1059_v3 }
  0x5c   :  { %845 = vmatpush3.bf16.msra.mxu0 %v938_v52 }
  0x5d   :  { %846 = vmatprep.subr.bf16.mxu0 %v939_v53 }
  0x5e   :  { %876 = vmatpush3.bf16.msra.mxu1 %v952_v4 }
  0x5f   :  { %877 = vmatprep.subr.bf16.mxu1 %v1059_v3 }
  0x60   :  { %847 = vmatpush3.bf16.msra.mxu0 %v940_v54 }
  0x61   :  { %848 = vmatprep.subr.bf16.mxu0 %v941_v55 }
  0x62   :  { %878 = vmatpush3.bf16.msra.mxu1 %v953_v5 }
  0x63   :  { %879 = vmatprep.subr.bf16.mxu1 %v1059_v3 }
  0x64   :  { %849 = vmatpush3.bf16.msra.mxu0 %v942_v56 }
  0x65   :  { %850 = vmatprep.subr.bf16.mxu0 %v943_v57 }
  0x66   :  { %880 = vmatpush3.bf16.msra.mxu1 %v954_v6 }
  0x67   :  { %881 = vmatprep.subr.bf16.mxu1 %v1059_v3 }
  0x68   :  { %851 = vmatpush3.bf16.msra.mxu0 %v944_v58 }
  0x69   :  { %852 = vmatprep.subr.bf16.mxu0 %v945_v59 }
  0x6a   :  { %882 = vmatpush3.bf16.msra.mxu1 %v955_v7 }
  0x6b   :  { %883 = vmatprep.subr.bf16.mxu1 %v1059_v3 }
  0x6c   :  { %853 = vmatpush3.bf16.msra.mxu0 %v946_v60 }
  0x6d   :  { %854 = vmatprep.subr.bf16.mxu0 %v947_v61 }
  0x6e   :  { %884 = vmatpush3.bf16.msra.mxu1 %v956_v8 }
  0x6f   :  { %885 = vmatprep.subr.bf16.mxu1 %v1059_v3 }
  0x70   :  { %855 = vmatpush3.bf16.msra.mxu0 %v948_v62 }
  0x71   :  { %856 = vmatprep.subr.bf16.mxu0 %v949_v63 }
  0x72   :  { %886 = vmatpush3.bf16.msra.mxu1 %v957_v9 }
  0x73   :  { %887 = vmatprep.subr.bf16.mxu1 %v1059_v3 }
  0x74   :  { %857 = vmatpush3.bf16.msra.mxu0 %v950_v0 }
  0x76   :  { %888 = vmatpush3.bf16.msra.mxu1 %v958_v10 }
  0x77   :  { %611 = vmatmul.mubr.bf16.vlgmr.msra.gmra.mrb[4].mxu0 %v187_v1 }
 0x12a   :  { %v814_v11 = vpop.f32.mrb[0].mxu0 }
 0x12b   :  { %v815_v13 = vpop.f32.mrb[1].mxu0 }
 0x12c   :  { %v816_v14 = vadd.f32 %v815_v13, %v814_v11  ;;  %v817_v15 = vpop.f32.mrb[2].mxu0  ;;  %v836_v16 = vpop.f32.mrb[0].mxu1 }
 0x12d   :  { %v818_v17 = vpop.f32.mrb[3].mxu0  ;;  %v837_v18 = vpop.f32.mrb[1].mxu1 }
 0x12e   :  { %v533_v19 = vadd.f32 %v816_v14, %v155_v12  ;;  %v838_v20 = vadd.f32 %v837_v18, %v836_v16  ;;  %v839_v21 = vpop.f32.mrb[2].mxu1 }
 0x12f   :  { %v840_v22 = vpop.f32.mrb[3].mxu1 }
 0x130   :  { %v573_v23 = vadd.f32 %v838_v20, %v533_v19 }
 0x14a   :  { %v858_v24 = vpop.f32.mrb[4].mxu0 }
 0x14b   :  { %v859_v25 = vpop.f32.mrb[5].mxu0 }
 0x14c   :  { %v860_v26 = vadd.f32 %v859_v25, %v858_v24  ;;  %v861_v27 = vpop.f32.mrb[6].mxu0 }
 0x14d   :  { %v862_v28 = vpop.f32.mrb[7].mxu0 }
 0x14e   :  { %v613_v29 = vadd.f32 %v860_v26, %v573_v23 }
 0x150   :  { %v618_v30 = vmax.f32 %v613_v29, 0.0 }
 0x152   :  { %v619_v31 = vpack.c.bf16 %v618_v30, %v618_v30 }
 0x154   :  { %890 = vmatmul.mubr.bf16.vlgmr.msra.gmra.mrb[4].mxu1 %v619_v31 }
 0x227   :  { %v719_v33 = vpop.f32.mrb[4].mxu1 }
 0x228   :  { %v720_v34 = vadd.f32 %v719_v33, %v636_v32  ;;  %v891_v35 = vpop.f32.mrb[5].mxu1 }
 0x229   :  { %v722_v36 = vpop.f32.mrb[6].mxu1 }
 0x22a   :  { %725 = vst [vmem:[#allocation8] sm:$0x1] %v720_v34  ;;  %v892_v37 = vpop.f32.mrb[7].mxu1 }
 0x22b   :  { %1036 = shalt.err (!%p1033_p0)
}
 0x22c   :  { %s1037_s2 = scalar_lea.hbm %s1151_s4, 16 }
 0x22d   :  { %p1038_p1 = scmp.ne.s32.totalorder %s1151_s4, %s1037_s2  ;;  %p1041_p2 = scmp.lt.u32.totalorder %s1037_s2, %s1151_s4 }
 0x22f   :  { %p1043_p3 = pnand %p1041_p2, %p1038_p1 }
 0x231   :  { %1046 = shalt.err (!%p1043_p3)
}
 0x232   :  { %735 = dma.vmem_to_hbm [thread:$0]  %s733_s29, 16, %s1151_s4, [#allocation4]  }
 0x233   :  { %1051 = dma.done.wait [#allocation4], 16  }
 0x234   :  { %1052 = vsyncadd [#allocation4], 4294967280 }
 0x235   :  { %739 = vsyncpa [#allocation3], 1 }
 0x236   :  { %740 = vsyncpa [#allocation6], 1 }
 0x237   :  { %741 = vsyncpa [#allocation4], 1 }

</bundles_post_ra>
